<compile_context>
chip_gen: v7x
topology: tpu7x:2x2x1
jax: 0.10.0
libtpu: 0.0.40
codegen_flags: <defaults>
</compile_context>

<pallas_src>
import jax
import jax.numpy as jnp
from jax.experimental import pallas as pl
from jax.experimental.pallas import tpu as pltpu

LANE = 128      # lane width (last dim)
SUBLANE = 8     # sublane width (second-to-last dim)


def _round_up(x, m):
    return (x + m - 1) // m * m


# -----------------------------------------------------------------------------
# Kernel: unrolled (Linear -> ReLU) stack, all weights resident in VMEM.
# refs layout: x_ref, w0, b0, w1, b1, ..., w{L-1}, b{L-1}, o_ref
# -----------------------------------------------------------------------------
def _make_mlp_kernel(n_layers):
    def kernel(*refs):
        x_ref = refs[0]
        o_ref = refs[-1]
        h = x_ref[...].astype(jnp.float32)              # (tm, Kp0)
        for l in range(n_layers):                        # unrolled at trace time
            wt_ref = refs[1 + 2 * l]                     # (Kp, Np)  bf16
            b_ref = refs[2 + 2 * l]                      # (1, Np)   f32
            y = jnp.dot(h.astype(wt_ref.dtype), wt_ref[...],
                        preferred_element_type=jnp.float32)
            h = jnp.maximum(y + b_ref[...], 0.0)         # f32 bias + ReLU epilogue
        o_ref[...] = h.astype(o_ref.dtype)
    return kernel


# -----------------------------------------------------------------------------
# Parameter init (PyTorch nn.Linear layout/semantics) + one-time packing
# -----------------------------------------------------------------------------
def init_mlp_simclr_params(key, in_dim, hid_dim, proj_dim, out_dim, n_hidden):
    """Raw params in PyTorch layout: list of (w (N,K) f32, b (N,) f32)."""
    dims = [(in_dim, hid_dim)]
    for i in range(n_hidden):
        dims.append((hid_dim, proj_dim if i == n_hidden - 1 else hid_dim))
    dims.append((proj_dim, out_dim))

    params = []
    for fan_in, fan_out in dims:
        key, kw, kb = jax.random.split(key, 3)
        bound = 1.0 / jnp.sqrt(fan_in)
        w = jax.random.uniform(kw, (fan_out, fan_in), jnp.float32, -bound, bound)
        b = jax.random.uniform(kb, (fan_out,), jnp.float32, -bound, bound)
        params.append((w, b))
    return params


def pack_params(params, compute_dtype=jnp.bfloat16):
    """One-time layout: transpose to (K,N), zero-pad K,N to multiples of 128,
    cast weights to the MXU compute dtype, keep biases (1,Np) f32."""
    packed = []
    for w, b in params:
        N, K = w.shape
        Kp, Np = _round_up(K, LANE), _round_up(N, LANE)
        wt = jnp.zeros((Kp, Np), jnp.float32).at[:K, :N].set(w.T)
        wt = wt.astype(compute_dtype)
        bp = jnp.zeros((1, Np), jnp.float32).at[0, :N].set(b)
        packed.append((wt, bp))
    return packed


# -----------------------------------------------------------------------------
# Forward: single fused pallas_call
# -----------------------------------------------------------------------------
def mlp_simclr_forward(x, packed, out_dim):
    B, K = x.shape
    n_layers = len(packed)
    Kp0 = packed[0][0].shape[0]
    Np_last = packed[-1][0].shape[1]

    # Batch tiling: small batches = single block; big batches tile at 256 rows.
    if B <= 256:
        tm = _round_up(B, SUBLANE)
        Bp = tm
    else:
        tm = 256
        Bp = _round_up(B, tm)

    x_pad = jnp.zeros((Bp, Kp0), x.dtype).at[:B, :K].set(x)

    in_specs = [pl.BlockSpec((tm, Kp0), lambda i: (i, 0))]
    flat_inputs = [x_pad]
    for wt, bp in packed:
        Kp, Np = wt.shape
        in_specs.append(pl.BlockSpec((Kp, Np), lambda i: (0, 0)))   # resident weight
        in_specs.append(pl.BlockSpec((1, Np), lambda i: (0, 0)))    # resident bias
        flat_inputs += [wt, bp]

    out_specs = pl.BlockSpec((tm, Np_last), lambda i: (i, 0))

    # VMEM budget: double-buffered weights/biases + activation tiles + headroom.
    w_bytes = sum(w.size * w.dtype.itemsize + b.size * b.dtype.itemsize
                  for w, b in packed)
    act_bytes = tm * max(Kp0, Np_last) * 4
    need = 2 * w_bytes + 4 * act_bytes + (2 << 20)
    compiler_kwargs = dict(dimension_semantics=("parallel",))
    if need > (16 << 20):
        # TODO(synk): once resident weights no longer fit (v7x 64 MiB), switch
        # to a K/N-tiled per-layer kernel with a pl.when accumulator.
        compiler_kwargs["vmem_limit_bytes"] = int(min(need, 60 << 20))

    out_pad = pl.pallas_call(
        _make_mlp_kernel(n_layers),
        out_shape=jax.ShapeDtypeStruct((Bp, Np_last), jnp.float32),
        grid_spec=pltpu.PrefetchScalarGridSpec(
            num_scalar_prefetch=0,
            grid=(Bp // tm,),
            in_specs=in_specs,
            out_specs=out_specs,
        ),
        compiler_params=pltpu.CompilerParams(**compiler_kwargs),
    )(*flat_inputs)

    return out_pad[:B, :out_dim]


mlp_simclr_forward_jit = jax.jit(mlp_simclr_forward, static_argnums=(2,))


# -----------------------------------------------------------------------------
# References
# -----------------------------------------------------------------------------
def mlp_simclr_ref_f32(x, params):
    """Pure-f32 PyTorch-semantics reference."""
    h = x
    for w, b in params:
        h = jnp.maximum(h @ w.T + b, 0.0)
    return h


def mlp_simclr_ref_packed(x, packed, out_dim):
    """Same arithmetic as the kernel (bf16 operands, f32 accumulation)."""
    B, K = x.shape
    Kp0 = packed[0][0].shape[0]
    h = jnp.zeros((B, Kp0), jnp.float32).at[:, :K].set(x)
    for wt, bp in packed:
        y = jnp.dot(h.astype(wt.dtype), wt, preferred_element_type=jnp.float32)
        h = jnp.maximum(y + bp, 0.0)
    return h[:, :out_dim]


if __name__ == "__main__":
    # Small shapes consistent with the module.
    B, in_dim, hid_dim, proj_dim, out_dim, n_hidden = 8, 16, 32, 32, 32, 3

    key = jax.random.PRNGKey(0)
    key, kx = jax.random.split(key)
    x = jax.random.normal(kx, (B, in_dim), jnp.float32)

    params = init_mlp_simclr_params(key, in_dim, hid_dim, proj_dim, out_dim, n_hidden)
    packed = pack_params(params)          # one-time transpose/pad/cast

    out = mlp_simclr_forward_jit(x, packed, out_dim)
    out = jax.block_until_ready(out)
    assert out.shape == (B, out_dim), out.shape

    # Tight check against the same-arithmetic (bf16 matmul, f32 acc) reference.
    ref_bf16 = mlp_simclr_ref_packed(x, packed, out_dim)
    err_bf16 = float(jnp.max(jnp.abs(out - ref_bf16)))
    assert jnp.allclose(out, ref_bf16, atol=2e-3, rtol=2e-3), err_bf16

    # Loose check against the pure-f32 module semantics (bf16 rounding only).
    ref_f32 = mlp_simclr_ref_f32(x, params)
    err_f32 = float(jnp.max(jnp.abs(out - ref_f32)))
    assert jnp.allclose(out, ref_f32, atol=5e-2, rtol=5e-2), err_f32

    print("KERNEL_OK")
</pallas_src>

<mosaic_0001>
module attributes {stable_mosaic.version = 11 : i64} {
  func.func @kernel(%arg0: i32, %arg1: memref<8x128xf32, #tpu.memory_space<vmem>>, %arg2: memref<128x128xbf16, #tpu.memory_space<vmem>>, %arg3: memref<1x128xf32, #tpu.memory_space<vmem>>, %arg4: memref<128x128xbf16, #tpu.memory_space<vmem>>, %arg5: memref<1x128xf32, #tpu.memory_space<vmem>>, %arg6: memref<128x128xbf16, #tpu.memory_space<vmem>>, %arg7: memref<1x128xf32, #tpu.memory_space<vmem>>, %arg8: memref<128x128xbf16, #tpu.memory_space<vmem>>, %arg9: memref<1x128xf32, #tpu.memory_space<vmem>>, %arg10: memref<128x128xbf16, #tpu.memory_space<vmem>>, %arg11: memref<1x128xf32, #tpu.memory_space<vmem>>, %arg12: memref<8x128xf32, #tpu.memory_space<vmem>>) attributes {dimension_semantics = [#tpu.dimension_semantics<parallel>], iteration_bounds = array<i64: 1>, scalar_prefetch = 0 : i64, scratch_operands = 0 : i64, tpu.core_type = #tpu.core_type<tc>, window_params = [{transform_indices = @transform_0, window_bounds = array<i64: 8, 128>}, {pipeline_mode = #tpu.pipeline_mode<synchronous>, transform_indices = @transform_1, window_bounds = array<i64: 128, 128>}, {pipeline_mode = #tpu.pipeline_mode<synchronous>, transform_indices = @transform_2, window_bounds = array<i64: 1, 128>}, {pipeline_mode = #tpu.pipeline_mode<synchronous>, transform_indices = @transform_3, window_bounds = array<i64: 128, 128>}, {pipeline_mode = #tpu.pipeline_mode<synchronous>, transform_indices = @transform_4, window_bounds = array<i64: 1, 128>}, {pipeline_mode = #tpu.pipeline_mode<synchronous>, transform_indices = @transform_5, window_bounds = array<i64: 128, 128>}, {pipeline_mode = #tpu.pipeline_mode<synchronous>, transform_indices = @transform_6, window_bounds = array<i64: 1, 128>}, {pipeline_mode = #tpu.pipeline_mode<synchronous>, transform_indices = @transform_7, window_bounds = array<i64: 128, 128>}, {pipeline_mode = #tpu.pipeline_mode<synchronous>, transform_indices = @transform_8, window_bounds = array<i64: 1, 128>}, {pipeline_mode = #tpu.pipeline_mode<synchronous>, transform_indices = @transform_9, window_bounds = array<i64: 128, 128>}, {pipeline_mode = #tpu.pipeline_mode<synchronous>, transform_indices = @transform_10, window_bounds = array<i64: 1, 128>}, {transform_indices = @transform_11, window_bounds = array<i64: 8, 128>}]} {
    %c0 = arith.constant 0 : index
    %c0_0 = arith.constant 0 : index
    %0 = vector.load %arg1[%c0, %c0_0] : memref<8x128xf32, #tpu.memory_space<vmem>>, vector<8x128xf32>
    %1 = arith.truncf %0 : vector<8x128xf32> to vector<8x128xbf16>
    %c0_1 = arith.constant 0 : index
    %c0_2 = arith.constant 0 : index
    %2 = vector.load %arg2[%c0_1, %c0_2] : memref<128x128xbf16, #tpu.memory_space<vmem>>, vector<128x128xbf16>
    %cst = arith.constant dense<0.000000e+00> : vector<8x128xf32>
    %3 = tpu.matmul %1, %2, %cst {dimension_numbers = #tpu.dot_dimension_numbers<[1], [0], [0], [1], [0, 0, 1, 1], [], []>} : vector<8x128xbf16>, vector<128x128xbf16>, vector<8x128xf32> -> vector<8x128xf32>
    %c0_3 = arith.constant 0 : index
    %c0_4 = arith.constant 0 : index
    %4 = vector.load %arg3[%c0_3, %c0_4] : memref<1x128xf32, #tpu.memory_space<vmem>>, vector<1x128xf32>
    %5 = vector.broadcast %4 : vector<1x128xf32> to vector<8x128xf32>
    %6 = arith.addf %3, %5 : vector<8x128xf32>
    %cst_5 = arith.constant 0.000000e+00 : f32
    %7 = vector.broadcast %cst_5 : f32 to vector<8x128xf32>
    %8 = arith.maximumf %6, %7 : vector<8x128xf32>
    %9 = arith.truncf %8 : vector<8x128xf32> to vector<8x128xbf16>
    %c0_6 = arith.constant 0 : index
    %c0_7 = arith.constant 0 : index
    %10 = vector.load %arg4[%c0_6, %c0_7] : memref<128x128xbf16, #tpu.memory_space<vmem>>, vector<128x128xbf16>
    %cst_8 = arith.constant dense<0.000000e+00> : vector<8x128xf32>
    %11 = tpu.matmul %9, %10, %cst_8 {dimension_numbers = #tpu.dot_dimension_numbers<[1], [0], [0], [1], [0, 0, 1, 1], [], []>} : vector<8x128xbf16>, vector<128x128xbf16>, vector<8x128xf32> -> vector<8x128xf32>
    %c0_9 = arith.constant 0 : index
    %c0_10 = arith.constant 0 : index
    %12 = vector.load %arg5[%c0_9, %c0_10] : memref<1x128xf32, #tpu.memory_space<vmem>>, vector<1x128xf32>
    %13 = vector.broadcast %12 : vector<1x128xf32> to vector<8x128xf32>
    %14 = arith.addf %11, %13 : vector<8x128xf32>
    %cst_11 = arith.constant 0.000000e+00 : f32
    %15 = vector.broadcast %cst_11 : f32 to vector<8x128xf32>
    %16 = arith.maximumf %14, %15 : vector<8x128xf32>
    %17 = arith.truncf %16 : vector<8x128xf32> to vector<8x128xbf16>
    %c0_12 = arith.constant 0 : index
    %c0_13 = arith.constant 0 : index
    %18 = vector.load %arg6[%c0_12, %c0_13] : memref<128x128xbf16, #tpu.memory_space<vmem>>, vector<128x128xbf16>
    %cst_14 = arith.constant dense<0.000000e+00> : vector<8x128xf32>
    %19 = tpu.matmul %17, %18, %cst_14 {dimension_numbers = #tpu.dot_dimension_numbers<[1], [0], [0], [1], [0, 0, 1, 1], [], []>} : vector<8x128xbf16>, vector<128x128xbf16>, vector<8x128xf32> -> vector<8x128xf32>
    %c0_15 = arith.constant 0 : index
    %c0_16 = arith.constant 0 : index
    %20 = vector.load %arg7[%c0_15, %c0_16] : memref<1x128xf32, #tpu.memory_space<vmem>>, vector<1x128xf32>
    %21 = vector.broadcast %20 : vector<1x128xf32> to vector<8x128xf32>
    %22 = arith.addf %19, %21 : vector<8x128xf32>
    %cst_17 = arith.constant 0.000000e+00 : f32
    %23 = vector.broadcast %cst_17 : f32 to vector<8x128xf32>
    %24 = arith.maximumf %22, %23 : vector<8x128xf32>
    %25 = arith.truncf %24 : vector<8x128xf32> to vector<8x128xbf16>
    %c0_18 = arith.constant 0 : index
    %c0_19 = arith.constant 0 : index
    %26 = vector.load %arg8[%c0_18, %c0_19] : memref<128x128xbf16, #tpu.memory_space<vmem>>, vector<128x128xbf16>
    %cst_20 = arith.constant dense<0.000000e+00> : vector<8x128xf32>
    %27 = tpu.matmul %25, %26, %cst_20 {dimension_numbers = #tpu.dot_dimension_numbers<[1], [0], [0], [1], [0, 0, 1, 1], [], []>} : vector<8x128xbf16>, vector<128x128xbf16>, vector<8x128xf32> -> vector<8x128xf32>
    %c0_21 = arith.constant 0 : index
    %c0_22 = arith.constant 0 : index
    %28 = vector.load %arg9[%c0_21, %c0_22] : memref<1x128xf32, #tpu.memory_space<vmem>>, vector<1x128xf32>
    %29 = vector.broadcast %28 : vector<1x128xf32> to vector<8x128xf32>
    %30 = arith.addf %27, %29 : vector<8x128xf32>
    %cst_23 = arith.constant 0.000000e+00 : f32
    %31 = vector.broadcast %cst_23 : f32 to vector<8x128xf32>
    %32 = arith.maximumf %30, %31 : vector<8x128xf32>
    %33 = arith.truncf %32 : vector<8x128xf32> to vector<8x128xbf16>
    %c0_24 = arith.constant 0 : index
    %c0_25 = arith.constant 0 : index
    %34 = vector.load %arg10[%c0_24, %c0_25] : memref<128x128xbf16, #tpu.memory_space<vmem>>, vector<128x128xbf16>
    %cst_26 = arith.constant dense<0.000000e+00> : vector<8x128xf32>
    %35 = tpu.matmul %33, %34, %cst_26 {dimension_numbers = #tpu.dot_dimension_numbers<[1], [0], [0], [1], [0, 0, 1, 1], [], []>} : vector<8x128xbf16>, vector<128x128xbf16>, vector<8x128xf32> -> vector<8x128xf32>
    %c0_27 = arith.constant 0 : index
    %c0_28 = arith.constant 0 : index
    %36 = vector.load %arg11[%c0_27, %c0_28] : memref<1x128xf32, #tpu.memory_space<vmem>>, vector<1x128xf32>
    %37 = vector.broadcast %36 : vector<1x128xf32> to vector<8x128xf32>
    %38 = arith.addf %35, %37 : vector<8x128xf32>
    %cst_29 = arith.constant 0.000000e+00 : f32
    %39 = vector.broadcast %cst_29 : f32 to vector<8x128xf32>
    %40 = arith.maximumf %38, %39 : vector<8x128xf32>
    %c0_30 = arith.constant 0 : index
    %c0_31 = arith.constant 0 : index
    %41 = vector.load %arg12[%c0_30, %c0_31] : memref<8x128xf32, #tpu.memory_space<vmem>>, vector<8x128xf32>
    tpu.vector_store %arg12[%c0_30, %c0_31], %40 {strides = array<i32>} : memref<8x128xf32, #tpu.memory_space<vmem>>, vector<8x128xf32>,
    return
  }
  func.func @transform_0(%arg0: i32) -> (i32, i32) {
    %c0_i32 = arith.constant 0 : i32
    %c0_i32_0 = arith.constant 0 : i32
    return %arg0, %c0_i32 : i32, i32
  }
  func.func @transform_1(%arg0: i32) -> (i32, i32) {
    %c0_i32 = arith.constant 0 : i32
    %c0_i32_0 = arith.constant 0 : i32
    %c0_i32_1 = arith.constant 0 : i32
    return %c0_i32, %c0_i32_0 : i32, i32
  }
  func.func @transform_2(%arg0: i32) -> (i32, i32) {
    %c0_i32 = arith.constant 0 : i32
    %c0_i32_0 = arith.constant 0 : i32
    %c0_i32_1 = arith.constant 0 : i32
    return %c0_i32, %c0_i32_0 : i32, i32
  }
  func.func @transform_3(%arg0: i32) -> (i32, i32) {
    %c0_i32 = arith.constant 0 : i32
    %c0_i32_0 = arith.constant 0 : i32
    %c0_i32_1 = arith.constant 0 : i32
    return %c0_i32, %c0_i32_0 : i32, i32
  }
  func.func @transform_4(%arg0: i32) -> (i32, i32) {
    %c0_i32 = arith.constant 0 : i32
    %c0_i32_0 = arith.constant 0 : i32
    %c0_i32_1 = arith.constant 0 : i32
    return %c0_i32, %c0_i32_0 : i32, i32
  }
  func.func @transform_5(%arg0: i32) -> (i32, i32) {
    %c0_i32 = arith.constant 0 : i32
    %c0_i32_0 = arith.constant 0 : i32
    %c0_i32_1 = arith.constant 0 : i32
    return %c0_i32, %c0_i32_0 : i32, i32
  }
  func.func @transform_6(%arg0: i32) -> (i32, i32) {
    %c0_i32 = arith.constant 0 : i32
    %c0_i32_0 = arith.constant 0 : i32
    %c0_i32_1 = arith.constant 0 : i32
    return %c0_i32, %c0_i32_0 : i32, i32
  }
  func.func @transform_7(%arg0: i32) -> (i32, i32) {
    %c0_i32 = arith.constant 0 : i32
    %c0_i32_0 = arith.constant 0 : i32
    %c0_i32_1 = arith.constant 0 : i32
    return %c0_i32, %c0_i32_0 : i32, i32
  }
  func.func @transform_8(%arg0: i32) -> (i32, i32) {
    %c0_i32 = arith.constant 0 : i32
    %c0_i32_0 = arith.constant 0 : i32
    %c0_i32_1 = arith.constant 0 : i32
    return %c0_i32, %c0_i32_0 : i32, i32
  }
  func.func @transform_9(%arg0: i32) -> (i32, i32) {
    %c0_i32 = arith.constant 0 : i32
    %c0_i32_0 = arith.constant 0 : i32
    %c0_i32_1 = arith.constant 0 : i32
    return %c0_i32, %c0_i32_0 : i32, i32
  }
  func.func @transform_10(%arg0: i32) -> (i32, i32) {
    %c0_i32 = arith.constant 0 : i32
    %c0_i32_0 = arith.constant 0 : i32
    %c0_i32_1 = arith.constant 0 : i32
    return %c0_i32, %c0_i32_0 : i32, i32
  }
  func.func @transform_11(%arg0: i32) -> (i32, i32) {
    %c0_i32 = arith.constant 0 : i32
    %c0_i32_0 = arith.constant 0 : i32
    return %arg0, %c0_i32 : i32, i32
  }
}

</mosaic_0001>

<bundles_post_ra>
// kernel: mlp_simclr_forward.1
= control target key start
LH: loop header
LB: loop body
LE: loop exit
PB: predicated region body
PF: predicated region fallthrough
CT: control target
= control target key end

     0   :  { %16 = vsyncpa [#allocation3], 0  ;;  %s1419_s0 = inlined_call_operand.vmem [shape: f32[8,128], index: 0, kind: input, shape index: {}]   ;;  %s1420_s1 = inlined_call_operand.hbm [shape: bf16[128,128], index: 1, kind: input, shape index: {}]   ;;  %s1421_s2 = inlined_call_operand.hbm [shape: f32[1,128], index: 2, kind: input, shape index: {}]   ;;  %s1422_s3 = inlined_call_operand.hbm [shape: bf16[128,128], index: 3, kind: input, shape index: {}]   ;;  %s1423_s4 = inlined_call_operand.hbm [shape: f32[1,128], index: 4, kind: input, shape index: {}]   ;;  %s1424_s5 = inlined_call_operand.hbm [shape: bf16[128,128], index: 5, kind: input, shape index: {}]   ;;  %s1425_s6 = inlined_call_operand.hbm [shape: f32[1,128], index: 6, kind: input, shape index: {}]   ;;  %s1426_s7 = inlined_call_operand.vmem [shape: bf16[128,128], index: 7, kind: input, shape index: {}]   ;;  %s1427_s8 = inlined_call_operand.vmem [shape: f32[1,128], index: 8, kind: input, shape index: {}]   ;;  %s1428_s9 = inlined_call_operand.hbm [shape: bf16[128,128], index: 9, kind: input, shape index: {}]   ;;  %s1429_s10 = inlined_call_operand.vmem [shape: f32[1,128], index: 10, kind: input, shape index: {}]   ;;  %s1430_s11 = inlined_call_operand.hbm [shape: f32[8,128], index: 11, kind: output, shape index: {}]  }
   0x1   :  { %17 = vsyncpa [#allocation6], 0 }
   0x2   :  { %18 = vsyncpa [#allocation9], 0 }
   0x3   :  { %19 = vsyncpa [#allocation12], 0 }
   0x4   :  { %20 = vsyncpa [#allocation4], 0  ;;  %s1142_s17 = smov [#allocation5]   ;;  %s1143_s19 = smov [#allocation8]  }
   0x5   :  { %s41_s18 = sshll.u32 %s1142_s17, 4  ;;  %s63_s20 = sshll.u32 %s1143_s19, 4  ;;  %s42_s18 = int_to_ptr.vmem [resolvable:$true] %s41_s18  ;;  %s64_s20 = int_to_ptr.vmem [resolvable:$true] %s63_s20 }
   0x6   :  { %s956_s23 = scalar_lea.hbm %s1421_s2, 16 }
   0x7   :  { %p957_p0 = scmp.ne.s32.totalorder %s1421_s2, %s956_s23  ;;  %p960_p1 = scmp.lt.u32.totalorder %s956_s23, %s1421_s2 }
   0x9   :  { %p962_p2 = pnand %p960_p1, %p957_p0 }
   0xb   :  { %965 = shalt.err (!%p962_p2)
}
   0xc   :  { %s966_s28 = scalar_lea.vmem %s42_s18, 16  ;;  %s970_s29 = scalar_lea.vmem %s42_s18, 32 }
   0xd   :  { %p967_p3 = scmp.ne.s32.totalorder %s42_s18, %s966_s28  ;;  %p971_p4 = scmp.lt.s32.totalorder %s42_s18, %s42_s18 }
   0xe   :  { %p972_p5 = scmp.lt.s32.totalorder %s970_s29, %s966_s28 }
  0x10   :  { %p973_p6 = por %p972_p5, %p971_p4 }
  0x12   :  { %p974_p7 = pnand %p973_p6, %p967_p3 }
  0x14   :  { %977 = shalt.err (!%p974_p7)
}
  0x15   :  { %44 = dma.hbm_to_vmem [thread:$0]  %s1421_s2, 16, %s42_s18, [#allocation6]  }
  0x16   :  { %s978_s15 = scalar_lea.hbm %s1423_s4, 16 }
  0x17   :  { %p979_p8 = scmp.ne.s32.totalorder %s1423_s4, %s978_s15  ;;  %p982_p9 = scmp.lt.u32.totalorder %s978_s15, %s1423_s4 }
  0x19   :  { %p984_p10 = pnand %p982_p9, %p979_p8 }
  0x1b   :  { %987 = shalt.err (!%p984_p10)
}
  0x1c   :  { %s988_s22 = scalar_lea.vmem %s64_s20, 16  ;;  %s992_s23 = scalar_lea.vmem %s64_s20, 32 }
  0x1d   :  { %p989_p11 = scmp.ne.s32.totalorder %s64_s20, %s988_s22  ;;  %p993_p12 = scmp.lt.s32.totalorder %s64_s20, %s64_s20 }
  0x1e   :  { %p994_p13 = scmp.lt.s32.totalorder %s992_s23, %s988_s22 }
  0x20   :  { %p995_p0 = por %p994_p13, %p993_p12 }
  0x22   :  { %p996_p1 = pnand %p995_p0, %p989_p11 }
  0x24   :  { %999 = shalt.err (!%p996_p1)
}
  0x25   :  { %66 = dma.hbm_to_vmem [thread:$0]  %s1423_s4, 16, %s64_s20, [#allocation9]  }
  0x26   :  { %s1144_s24 = smov [#allocation11]   ;;  %s1145_s26 = smov [#allocation2]  }
  0x27   :  { %s85_s25 = sshll.u32 %s1144_s24, 4  ;;  %s28_s27 = sshll.u32 %s1145_s26, 4  ;;  %s86_s25 = int_to_ptr.vmem [resolvable:$true] %s85_s25  ;;  %s1238_s27 = int_to_ptr.vmem [resolvable:$true] %s28_s27 }
  0x28   :  { %s1000_s30 = scalar_lea.hbm %s1425_s6, 16 }
  0x29   :  { %p1001_p2 = scmp.ne.s32.totalorder %s1425_s6, %s1000_s30  ;;  %p1004_p3 = scmp.lt.u32.totalorder %s1000_s30, %s1425_s6 }
  0x2b   :  { %p1006_p4 = pnand %p1004_p3, %p1001_p2 }
  0x2d   :  { %1009 = shalt.err (!%p1006_p4)
}
  0x2e   :  { %s1010_s4 = scalar_lea.vmem %s86_s25, 16  ;;  %s1014_s20 = scalar_lea.vmem %s86_s25, 32 }
  0x2f   :  { %p1011_p5 = scmp.ne.s32.totalorder %s86_s25, %s1010_s4  ;;  %p1015_p6 = scmp.lt.s32.totalorder %s86_s25, %s86_s25 }
  0x30   :  { %p1016_p7 = scmp.lt.s32.totalorder %s1014_s20, %s1010_s4 }
  0x32   :  { %p1017_p8 = por %p1016_p7, %p1015_p6 }
  0x34   :  { %p1018_p9 = pnand %p1017_p8, %p1011_p5 }
  0x36   :  { %1021 = shalt.err (!%p1018_p9)
}
  0x37   :  { %88 = dma.hbm_to_vmem [thread:$0]  %s1425_s6, 16, %s86_s25, [#allocation12]  }
  0x38   :  { %s1022_s22 = scalar_lea.hbm %s1420_s1, 1024 }
  0x39   :  { %p1023_p10 = scmp.ne.s32.totalorder %s1420_s1, %s1022_s22  ;;  %p1026_p11 = scmp.lt.u32.totalorder %s1022_s22, %s1420_s1 }
  0x3b   :  { %p1028_p12 = pnand %p1026_p11, %p1023_p10 }
  0x3d   :  { %1031 = shalt.err (!%p1028_p12)
}
  0x3e   :  { %s1032_s26 = scalar_lea.vmem %s1238_s27, 1024  ;;  %p1037_p0 = scmp.lt.s32.totalorder %s1238_s27, %s1238_s27 }
  0x3f   :  { %p1033_p13 = scmp.ne.s32.totalorder %s1238_s27, %s1032_s26  ;;  %p1038_p1 = scmp.lt.s32.totalorder %s1032_s26, %s1032_s26 }
  0x41   :  { %p1039_p2 = por %p1038_p1, %p1037_p0 }
  0x43   :  { %p1040_p3 = pnand %p1039_p2, %p1033_p13 }
  0x45   :  { %1043 = shalt.err (!%p1040_p3)
}
  0x46   :  { %s1146_s6 = smov 64   ;;  %s1147_s25 = smov 4  }
  0x47   :  { %34 = dma.hbm_to_vmem [thread:$0]  %s1420_s1, 1024, %s1238_s27, [#allocation3], %s1146_s6, %s1146_s6, %s1147_s25  }
  0x48   :  { %s1148_s30 = smov [#allocation7]   ;;  %s1149_s13 = smov [#allocation10]  }
  0x49   :  { %s50_s12 = sshll.u32 %s1148_s30, 4  ;;  %s72_s14 = sshll.u32 %s1149_s13, 4  ;;  %s51_s12 = int_to_ptr.vmem [resolvable:$true] %s50_s12  ;;  %s1272_s14 = int_to_ptr.vmem [resolvable:$true] %s72_s14 }
  0x4a   :  { %s1044_s20 = scalar_lea.hbm %s1422_s3, 1024 }
  0x4b   :  { %p1045_p4 = scmp.ne.s32.totalorder %s1422_s3, %s1044_s20  ;;  %p1048_p5 = scmp.lt.u32.totalorder %s1044_s20, %s1422_s3 }
  0x4d   :  { %p1050_p6 = pnand %p1048_p5, %p1045_p4 }
  0x4f   :  { %1053 = shalt.err (!%p1050_p6)
}
  0x50   :  { %s1054_s1 = scalar_lea.vmem %s51_s12, 1024  ;;  %p1059_p8 = scmp.lt.s32.totalorder %s51_s12, %s51_s12 }
  0x51   :  { %p1055_p7 = scmp.ne.s32.totalorder %s51_s12, %s1054_s1  ;;  %p1060_p9 = scmp.lt.s32.totalorder %s1054_s1, %s1054_s1 }
  0x53   :  { %p1061_p10 = por %p1060_p9, %p1059_p8 }
  0x55   :  { %p1062_p11 = pnand %p1061_p10, %p1055_p7 }
  0x57   :  { %1065 = shalt.err (!%p1062_p11)
}
  0x58   :  { %56 = dma.hbm_to_vmem [thread:$0]  %s1422_s3, 1024, %s51_s12, [#allocation6], %s1146_s6, %s1146_s6, %s1147_s25  }
  0x59   :  { %s1066_s18 = scalar_lea.hbm %s1424_s5, 1024 }
  0x5a   :  { %p1067_p12 = scmp.ne.s32.totalorder %s1424_s5, %s1066_s18  ;;  %p1070_p13 = scmp.lt.u32.totalorder %s1066_s18, %s1424_s5 }
  0x5c   :  { %p1072_p0 = pnand %p1070_p13, %p1067_p12 }
  0x5e   :  { %1075 = shalt.err (!%p1072_p0)
}
  0x5f   :  { %s1076_s30 = scalar_lea.vmem %s1272_s14, 1024  ;;  %p1081_p2 = scmp.lt.s32.totalorder %s1272_s14, %s1272_s14 }
  0x60   :  { %p1077_p1 = scmp.ne.s32.totalorder %s1272_s14, %s1076_s30  ;;  %p1082_p3 = scmp.lt.s32.totalorder %s1076_s30, %s1076_s30 }
  0x62   :  { %p1083_p4 = por %p1082_p3, %p1081_p2 }
  0x64   :  { %p1084_p5 = pnand %p1083_p4, %p1077_p1 }
  0x66   :  { %1087 = shalt.err (!%p1084_p5)
}
  0x67   :  { %78 = dma.hbm_to_vmem [thread:$0]  %s1424_s5, 1024, %s1272_s14, [#allocation9], %s1146_s6, %s1146_s6, %s1147_s25  }
  0x68   :  { %s1150_s13 = smov [#allocation13]   ;;  %s1088_s16 = scalar_lea.hbm %s1428_s9, 1024 }
  0x69   :  { %s98_s15 = sshll.u32 %s1150_s13, 4  ;;  %p1089_p6 = scmp.ne.s32.totalorder %s1428_s9, %s1088_s16  ;;  %s99_s15 = int_to_ptr.vmem [resolvable:$true] %s98_s15 }
  0x6a   :  { %p1092_p7 = scmp.lt.u32.totalorder %s1088_s16, %s1428_s9 }
  0x6c   :  { %p1094_p8 = pnand %p1092_p7, %p1089_p6 }
  0x6e   :  { %1097 = shalt.err (!%p1094_p8)
}
  0x6f   :  { %s1098_s27 = scalar_lea.vmem %s99_s15, 1024  ;;  %p1103_p10 = scmp.lt.s32.totalorder %s99_s15, %s99_s15 }
  0x70   :  { %p1099_p9 = scmp.ne.s32.totalorder %s99_s15, %s1098_s27  ;;  %p1104_p11 = scmp.lt.s32.totalorder %s1098_s27, %s1098_s27 }
  0x72   :  { %p1105_p12 = por %p1104_p11, %p1103_p10 }
  0x74   :  { %p1106_p13 = pnand %p1105_p12, %p1099_p9 }
  0x76   :  { %1109 = shalt.err (!%p1106_p13)
}
  0x77   :  { %104 = dma.hbm_to_vmem [thread:$0]  %s1428_s9, 1024, %s99_s15, [#allocation12], %s1146_s6, %s1146_s6, %s1147_s25  }
  0x78   :  { %1132 = dma.done.wait [#allocation3], 1024  }
  0x79   :  { %1133 = vsyncadd [#allocation3], 4294966272 }
  0x7a   :  { %1134 = dma.done.wait [#allocation6], 1040  }
  0x7b   :  { %1135 = vsyncadd [#allocation6], 4294966256 }
  0x7c   :  { %1136 = dma.done.wait [#allocation9], 1040  }
  0x7d   :  { %1137 = vsyncadd [#allocation9], 4294966256 }
  0x7e   :  { %1138 = dma.done.wait [#allocation12], 1040  }
  0x7f   :  { %1139 = vsyncadd [#allocation12], 4294966256  ;;  %v1151_v0 = vmov 0.0   ;;  %vm1152_vm0 = vmmov 0   ;;  %v916_v1 = vld [vmem:[#allocation2] sm:$0xff]   ;;  %v917_v2 = vld [vmem:[#allocation2 + $0x8] sm:$0xff]  }
  0x80   :  { %804 = vmatprep.subr.bf16.mxu0 %v1151_v0  ;;  %820 = vmatprep.mubr.msk.bf16.mxu0 %vm1152_vm0, %v1151_v0  ;;  %v918_v3 = vld [vmem:[#allocation2 + $0x10] sm:$0xff]   ;;  %v924_v4 = vld [vmem:[#allocation7] sm:$0xff]   ;;  %v919_v5 = vld [vmem:[#allocation2 + $0x18] sm:$0xff]   ;;  %s1153_s19 = smov [#allocation14]  }
  0x81   :  { %824 = vmatprep.subr.bf16.mxu1 %v1151_v0  ;;  %840 = vmatprep.mubr.msk.bf16.mxu1 %vm1152_vm0, %v1151_v0  ;;  %v925_v6 = vld [vmem:[#allocation7 + $0x8] sm:$0xff]   ;;  %v920_v7 = vld [vmem:[#allocation2 + $0x20] sm:$0xff]   ;;  %v926_v8 = vld [vmem:[#allocation7 + $0x10] sm:$0xff]   ;;  %s702_s21 = sshll.u32 %s1153_s19, 4  ;;  %s703_s21 = int_to_ptr.vmem [resolvable:$true] %s702_s21 }
  0x82   :  { %805 = vmatpush3.bf16.msra.mxu0 %v916_v1  ;;  %825 = vmatpush3.bf16.msra.mxu1 %v924_v4  ;;  %v921_v9 = vld [vmem:[#allocation2 + $0x28] sm:$0xff]   ;;  %v927_v10 = vld [vmem:[#allocation7 + $0x18] sm:$0xff]   ;;  %v922_v11 = vld [vmem:[#allocation2 + $0x30] sm:$0xff]   ;;  %p1115_p1 = scmp.lt.s32.totalorder %s703_s21, %s703_s21 }
  0x83   :  { %806 = vmatprep.subr.bf16.mxu0 %v1151_v0  ;;  %826 = vmatprep.subr.bf16.mxu1 %v1151_v0  ;;  %v928_v12 = vld [vmem:[#allocation7 + $0x20] sm:$0xff]   ;;  %v923_v13 = vld [vmem:[#allocation2 + $0x38] sm:$0xff]   ;;  %v929_v15 = vld [vmem:[#allocation7 + $0x28] sm:$0xff]  }
  0x84   :  { %v129_v14 = vld [vmem:[%s1419_s0] sm:$0xff]  ;;  %v930_v17 = vld [vmem:[#allocation7 + $0x30] sm:$0xff]   ;;  %v941_v36 = vld [vmem:[%s1426_s7 + $0x8] sm:$0xff]  }
  0x85   :  { %v130_v16 = vpack.c.bf16 %v129_v14, %v129_v14  ;;  %v931_v18 = vld [vmem:[#allocation7 + $0x38] sm:$0xff]   ;;  %v932_v19 = vld [vmem:[#allocation10] sm:$0xff]   ;;  %v933_v20 = vld [vmem:[#allocation10 + $0x8] sm:$0xff]  }
  0x86   :  { %807 = vmatpush3.bf16.msra.mxu0 %v917_v2  ;;  %827 = vmatpush3.bf16.msra.mxu1 %v925_v6  ;;  %v934_v21 = vld [vmem:[#allocation10 + $0x10] sm:$0xff]   ;;  %v935_v22 = vld [vmem:[#allocation10 + $0x18] sm:$0xff]   ;;  %v936_v23 = vld [vmem:[#allocation10 + $0x20] sm:$0xff]  }
  0x87   :  { %808 = vmatprep.subr.bf16.mxu0 %v1151_v0  ;;  %828 = vmatprep.subr.bf16.mxu1 %v1151_v0  ;;  %v937_v24 = vld [vmem:[#allocation10 + $0x28] sm:$0xff]   ;;  %v714_v25 = vld [vmem:[#allocation5] ss:$0 sm:$0xff]  ;;  %v938_v33 = vld [vmem:[#allocation10 + $0x30] sm:$0xff]  }
  0x88   :  { %v939_v34 = vld [vmem:[#allocation10 + $0x38] sm:$0xff]   ;;  %v942_v37 = vld [vmem:[%s1426_s7 + $0x10] sm:$0xff]   ;;  %v945_v40 = vld [vmem:[%s1426_s7 + $0x28] sm:$0xff]  }
  0x89   :  { %v940_v35 = vld [vmem:[%s1426_s7] sm:$0xff]   ;;  %v943_v38 = vld [vmem:[%s1426_s7 + $0x18] sm:$0xff]   ;;  %v946_v49 = vld [vmem:[%s1426_s7 + $0x30] sm:$0xff]  }
  0x8a   :  { %809 = vmatpush3.bf16.msra.mxu0 %v918_v3  ;;  %829 = vmatpush3.bf16.msra.mxu1 %v926_v8  ;;  %v944_v39 = vld [vmem:[%s1426_s7 + $0x20] sm:$0xff]   ;;  %v947_v50 = vld [vmem:[%s1426_s7 + $0x38] sm:$0xff]   ;;  %v949_v52 = vld [vmem:[#allocation13 + $0x8] sm:$0xff]  }
  0x8b   :  { %810 = vmatprep.subr.bf16.mxu0 %v1151_v0  ;;  %830 = vmatprep.subr.bf16.mxu1 %v1151_v0  ;;  %v723_v41 = vld [vmem:[#allocation8] ss:$0 sm:$0xff]  ;;  %v948_v51 = vld [vmem:[#allocation13] sm:$0xff]   ;;  %v950_v53 = vld [vmem:[#allocation13 + $0x10] sm:$0xff]  }
  0x8c   :  { %v951_v54 = vld [vmem:[#allocation13 + $0x18] sm:$0xff]   ;;  %v952_v55 = vld [vmem:[#allocation13 + $0x20] sm:$0xff]   ;;  %v953_v56 = vld [vmem:[#allocation13 + $0x28] sm:$0xff]  }
  0x8d   :  { %v732_v57 = vld [vmem:[#allocation11] ss:$0 sm:$0xff]  ;;  %v954_v2 = vld [vmem:[#allocation13 + $0x30] sm:$0xff]   ;;  %v741_v4 = vld [vmem:[%s1427_s8] ss:$0 sm:$0xff]  ;;  %s1110_s8 = scalar_lea.vmem %s703_s21, 128 }
  0x8e   :  { %811 = vmatpush3.bf16.msra.mxu0 %v919_v5  ;;  %831 = vmatpush3.bf16.msra.mxu1 %v927_v10  ;;  %v955_v3 = vld [vmem:[#allocation13 + $0x38] sm:$0xff]   ;;  %p1111_p0 = scmp.ne.s32.totalorder %s703_s21, %s1110_s8  ;;  %p1116_p2 = scmp.lt.s32.totalorder %s1110_s8, %s1110_s8 }
  0x8f   :  { %812 = vmatprep.subr.bf16.mxu0 %v1151_v0  ;;  %832 = vmatprep.subr.bf16.mxu1 %v1151_v0 }
  0x90   :  { %p1117_p3 = por %p1116_p2, %p1115_p1 }
  0x92   :  { %813 = vmatpush3.bf16.msra.mxu0 %v920_v7  ;;  %833 = vmatpush3.bf16.msra.mxu1 %v928_v12  ;;  %v750_v12 = vld [vmem:[%s1429_s10] ss:$0 sm:$0xff]  ;;  %p1118_p4 = pnand %p1117_p3, %p1111_p0 }
  0x93   :  { %814 = vmatprep.subr.bf16.mxu0 %v1151_v0  ;;  %834 = vmatprep.subr.bf16.mxu1 %v1151_v0 }
  0x96   :  { %815 = vmatpush3.bf16.msra.mxu0 %v921_v9  ;;  %835 = vmatpush3.bf16.msra.mxu1 %v929_v15 }
  0x97   :  { %816 = vmatprep.subr.bf16.mxu0 %v1151_v0  ;;  %836 = vmatprep.subr.bf16.mxu1 %v1151_v0 }
  0x9a   :  { %817 = vmatpush3.bf16.msra.mxu0 %v922_v11  ;;  %837 = vmatpush3.bf16.msra.mxu1 %v930_v17 }
  0x9b   :  { %818 = vmatprep.subr.bf16.mxu0 %v1151_v0  ;;  %838 = vmatprep.subr.bf16.mxu1 %v1151_v0 }
  0x9e   :  { %819 = vmatpush3.bf16.msra.mxu0 %v923_v13  ;;  %839 = vmatpush3.bf16.msra.mxu1 %v931_v18 }
  0x9f   :  { %844 = vmatprep.subr.bf16.mxu0 %v1151_v0  ;;  %864 = vmatprep.subr.bf16.mxu1 %v1151_v0 }
  0xa1   :  { %821 = vmatmul.mubr.bf16.vlgmr.msra.gmra.mrb[0].mxu0 %v130_v16 }
  0xa2   :  { %860 = vmatprep.mubr.msk.bf16.mxu0 %vm1152_vm0, %v1151_v0  ;;  %845 = vmatpush3.bf16.msra.mxu0 %v932_v19 }
  0xa3   :  { %846 = vmatprep.subr.bf16.mxu0 %v1151_v0 }
  0xa6   :  { %847 = vmatpush3.bf16.msra.mxu0 %v933_v20 }
  0xa7   :  { %848 = vmatprep.subr.bf16.mxu0 %v1151_v0 }
  0xaa   :  { %849 = vmatpush3.bf16.msra.mxu0 %v934_v21 }
  0xab   :  { %850 = vmatprep.subr.bf16.mxu0 %v1151_v0 }
  0xae   :  { %851 = vmatpush3.bf16.msra.mxu0 %v935_v22 }
  0xaf   :  { %852 = vmatprep.subr.bf16.mxu0 %v1151_v0 }
  0xb2   :  { %853 = vmatpush3.bf16.msra.mxu0 %v936_v23 }
  0xb3   :  { %854 = vmatprep.subr.bf16.mxu0 %v1151_v0 }
  0xb6   :  { %855 = vmatpush3.bf16.msra.mxu0 %v937_v24 }
  0xb7   :  { %856 = vmatprep.subr.bf16.mxu0 %v1151_v0 }
  0xba   :  { %857 = vmatpush3.bf16.msra.mxu0 %v938_v33 }
  0xbb   :  { %858 = vmatprep.subr.bf16.mxu0 %v1151_v0 }
  0xbe   :  { %859 = vmatpush3.bf16.msra.mxu0 %v939_v34 }
  0xbf   :  { %884 = vmatprep.subr.bf16.mxu0 %v1151_v0 }
 0x174   :  { %v236_v26 = vpop.f32.mrb[0].mxu0 }
 0x175   :  { %v237_v27 = vadd.f32 %v714_v25, %v236_v26  ;;  %v822_v28 = vpop.f32.mrb[1].mxu0 }
 0x176   :  { %v239_v29 = vpop.f32.mrb[2].mxu0 }
 0x177   :  { %v242_v30 = vmax.f32 %v237_v27, 0.0  ;;  %v823_v31 = vpop.f32.mrb[3].mxu0 }
 0x179   :  { %v243_v32 = vpack.c.bf16 %v242_v30, %v242_v30 }
 0x17b   :  { %841 = vmatmul.mubr.bf16.vlgmr.msra.gmra.mrb[0].mxu1 %v243_v32 }
 0x17c   :  { %880 = vmatprep.mubr.msk.bf16.mxu1 %vm1152_vm0, %v1151_v0  ;;  %865 = vmatpush3.bf16.msra.mxu1 %v940_v35 }
 0x17d   :  { %866 = vmatprep.subr.bf16.mxu1 %v1151_v0 }
 0x180   :  { %867 = vmatpush3.bf16.msra.mxu1 %v941_v36 }
 0x181   :  { %868 = vmatprep.subr.bf16.mxu1 %v1151_v0 }
 0x184   :  { %869 = vmatpush3.bf16.msra.mxu1 %v942_v37 }
 0x185   :  { %870 = vmatprep.subr.bf16.mxu1 %v1151_v0 }
 0x188   :  { %871 = vmatpush3.bf16.msra.mxu1 %v943_v38 }
 0x189   :  { %872 = vmatprep.subr.bf16.mxu1 %v1151_v0 }
 0x18c   :  { %873 = vmatpush3.bf16.msra.mxu1 %v944_v39 }
 0x18d   :  { %874 = vmatprep.subr.bf16.mxu1 %v1151_v0 }
 0x190   :  { %875 = vmatpush3.bf16.msra.mxu1 %v945_v40 }
 0x191   :  { %876 = vmatprep.subr.bf16.mxu1 %v1151_v0 }
 0x194   :  { %877 = vmatpush3.bf16.msra.mxu1 %v946_v49 }
 0x195   :  { %878 = vmatprep.subr.bf16.mxu1 %v1151_v0 }
 0x198   :  { %879 = vmatpush3.bf16.msra.mxu1 %v947_v50 }
 0x24e   :  { %v349_v42 = vpop.f32.mrb[0].mxu1 }
 0x24f   :  { %v350_v43 = vadd.f32 %v723_v41, %v349_v42  ;;  %v842_v44 = vpop.f32.mrb[1].mxu1 }
 0x250   :  { %v352_v45 = vpop.f32.mrb[2].mxu1 }
 0x251   :  { %v355_v46 = vmax.f32 %v350_v43, 0.0  ;;  %v843_v47 = vpop.f32.mrb[3].mxu1 }
 0x253   :  { %v356_v48 = vpack.c.bf16 %v355_v46, %v355_v46 }
 0x255   :  { %861 = vmatmul.mubr.bf16.vlgmr.msra.gmra.mrb[4].mxu0 %v356_v48 }
 0x256   :  { %900 = vmatprep.mubr.msk.bf16.mxu0 %vm1152_vm0, %v1151_v0  ;;  %885 = vmatpush3.bf16.msra.mxu0 %v948_v51 }
 0x257   :  { %886 = vmatprep.subr.bf16.mxu0 %v1151_v0 }
 0x25a   :  { %887 = vmatpush3.bf16.msra.mxu0 %v949_v52 }
 0x25b   :  { %888 = vmatprep.subr.bf16.mxu0 %v1151_v0 }
 0x25e   :  { %889 = vmatpush3.bf16.msra.mxu0 %v950_v53 }
 0x25f   :  { %890 = vmatprep.subr.bf16.mxu0 %v1151_v0 }
 0x262   :  { %891 = vmatpush3.bf16.msra.mxu0 %v951_v54 }
 0x263   :  { %892 = vmatprep.subr.bf16.mxu0 %v1151_v0 }
 0x266   :  { %893 = vmatpush3.bf16.msra.mxu0 %v952_v55 }
 0x267   :  { %894 = vmatprep.subr.bf16.mxu0 %v1151_v0 }
 0x26a   :  { %895 = vmatpush3.bf16.msra.mxu0 %v953_v56 }
 0x26b   :  { %896 = vmatprep.subr.bf16.mxu0 %v1151_v0 }
 0x26e   :  { %897 = vmatpush3.bf16.msra.mxu0 %v954_v2 }
 0x26f   :  { %898 = vmatprep.subr.bf16.mxu0 %v1151_v0 }
 0x272   :  { %899 = vmatpush3.bf16.msra.mxu0 %v955_v3 }
 0x328   :  { %v462_v58 = vpop.f32.mrb[4].mxu0 }
 0x329   :  { %v463_v59 = vadd.f32 %v732_v57, %v462_v58  ;;  %v862_v60 = vpop.f32.mrb[5].mxu0 }
 0x32a   :  { %v465_v61 = vpop.f32.mrb[6].mxu0 }
 0x32b   :  { %v468_v62 = vmax.f32 %v463_v59, 0.0  ;;  %v863_v63 = vpop.f32.mrb[7].mxu0 }
 0x32d   :  { %v469_v1 = vpack.c.bf16 %v468_v62, %v468_v62 }
 0x32f   :  { %881 = vmatmul.mubr.bf16.vlgmr.msra.gmra.mrb[4].mxu1 %v469_v1 }
 0x402   :  { %v575_v5 = vpop.f32.mrb[4].mxu1 }
 0x403   :  { %v576_v6 = vadd.f32 %v741_v4, %v575_v5  ;;  %v882_v7 = vpop.f32.mrb[5].mxu1 }
 0x404   :  { %v578_v8 = vpop.f32.mrb[6].mxu1 }
 0x405   :  { %v581_v9 = vmax.f32 %v576_v6, 0.0  ;;  %v883_v10 = vpop.f32.mrb[7].mxu1 }
 0x407   :  { %v582_v11 = vpack.c.bf16 %v581_v9, %v581_v9 }
 0x409   :  { %901 = vmatmul.mubr.bf16.vlgmr.msra.gmra.mrb[8].mxu0 %v582_v11 }
 0x4dc   :  { %v688_v13 = vpop.f32.mrb[8].mxu0 }
 0x4dd   :  { %v689_v0 = vadd.f32 %v750_v12, %v688_v13  ;;  %v902_v14 = vpop.f32.mrb[9].mxu0 }
 0x4de   :  { %v691_v15 = vpop.f32.mrb[10].mxu0 }
 0x4df   :  { %v694_v16 = vmax.f32 %v689_v0, 0.0  ;;  %v903_v17 = vpop.f32.mrb[11].mxu0 }
 0x4e1   :  { %695 = vst [vmem:[#allocation14] sm:$0xff] %v694_v16 }
 0x4e2   :  { %1121 = shalt.err (!%p1118_p4)
}
 0x4e3   :  { %s1122_s10 = scalar_lea.hbm %s1430_s11, 128 }
 0x4e4   :  { %p1123_p5 = scmp.ne.s32.totalorder %s1430_s11, %s1122_s10  ;;  %p1126_p6 = scmp.lt.u32.totalorder %s1122_s10, %s1430_s11 }
 0x4e6   :  { %p1128_p7 = pnand %p1126_p6, %p1123_p5 }
 0x4e8   :  { %1131 = shalt.err (!%p1128_p7)
}
 0x4e9   :  { %705 = dma.vmem_to_hbm [thread:$0]  %s703_s21, 128, %s1430_s11, [#allocation4]  }
 0x4ea   :  { %1140 = dma.done.wait [#allocation4], 128  }
 0x4eb   :  { %1141 = vsyncadd [#allocation4], 4294967168 }
 0x4ec   :  { %709 = vsyncpa [#allocation3], 1 }
 0x4ed   :  { %710 = vsyncpa [#allocation6], 1 }
 0x4ee   :  { %711 = vsyncpa [#allocation9], 1 }
 0x4ef   :  { %712 = vsyncpa [#allocation12], 1 }
 0x4f0   :  { %713 = vsyncpa [#allocation4], 1 }

</bundles_post_ra>
